<compile_context>
chip_gen: v7x
topology: tpu7x:2x2x1
jax: 0.10.0
libtpu: 0.0.40
codegen_flags: <defaults>
</compile_context>

<pallas_src>
import math

import jax
import jax.numpy as jnp
from jax import lax
from jax.experimental import pallas as pl
from jax.experimental.pallas import tpu as pltpu


def _round_up(n, m):
    return ((n + m - 1) // m) * m


# ---------------------------------------------------------------------------
# Kernel
# ---------------------------------------------------------------------------
def make_clines_vae_kernel(n_views, lp):
    """Gridded kernel: grid = (batch_tiles, 2*V); g < V encode, g >= V decode."""
    V = n_views
    Lp = lp

    def kernel(x_ref, ew1_ref, eb1_ref, ew2_ref, eb2_ref,
               dw1_ref, db1_ref, dw2_ref, db2_ref, eps_ref,
               xhat_ref, mulv_ref,
               prec_sum, mu_weighted, z_scr):
        g = pl.program_id(1)

        @pl.when(g == 0)
        def _init():
            prec_sum[...] = jnp.zeros_like(prec_sum)
            mu_weighted[...] = jnp.zeros_like(mu_weighted)

        # ---- encode view g: Linear -> (Dropout = identity) -> ReLU -> Linear(2*Lp)
        @pl.when(g < V)
        def _encode():
            x = x_ref[0]                                       # (TB, Dp) bf16
            h = jnp.dot(x, ew1_ref[0],
                        preferred_element_type=jnp.float32) + eb1_ref[0]
            h = jnp.maximum(h, 0.0).astype(jnp.bfloat16)
            h2 = jnp.dot(h, ew2_ref[0],
                         preferred_element_type=jnp.float32) + eb2_ref[0]
            mu_v = h2[:, :Lp]            # 128-lane-aligned slice (mu head)
            lv_v = h2[:, Lp:]            # 128-lane-aligned slice (logvar head)
            prec_v = jnp.exp(-lv_v)      # 1 / exp(logvar)
            prec_sum[...] = prec_sum[...] + prec_v
            mu_weighted[...] = mu_weighted[...] + mu_v * prec_v

        # ---- PoE fusion + reparameterization after the last encoder ----
        @pl.when(g == V - 1)
        def _poe():
            ps = prec_sum[...]
            inv = pl.reciprocal(ps, approx=True)               # EUP slot
            mu_joint = mu_weighted[...] * inv
            logvar_joint = -jnp.log(ps)
            std = lax.rsqrt(ps)                                # exp(0.5*logvar_joint)
            z_scr[...] = mu_joint + eps_ref[...] * std
            # mu in lanes [0,Lp), logvar in [Lp,2Lp): aligned, unmasked store.
            mulv_ref[...] = jnp.concatenate([mu_joint, logvar_joint], axis=1)

        # ---- decode view (g - V): Linear -> ReLU -> Linear ----
        @pl.when(g >= V)
        def _decode():
            z = z_scr[...].astype(jnp.bfloat16)
            h = jnp.dot(z, dw1_ref[0],
                        preferred_element_type=jnp.float32) + db1_ref[0]
            h = jnp.maximum(h, 0.0).astype(jnp.bfloat16)
            xhat_ref[0] = jnp.dot(h, dw2_ref[0],
                                  preferred_element_type=jnp.float32) + db2_ref[0]

    return kernel


# ---------------------------------------------------------------------------
# Wrapper
# ---------------------------------------------------------------------------
def clines_vae_forward(views, enc_params, dec_params, hidden_dim, latent_dim, eps):
    """Equivalent of ClinesVAE.forward(views) -> (x_hat, mu_joint, logvar_joint)."""
    V = len(views)
    B = int(views[0].shape[0])
    dims = [int(v.shape[1]) for v in views]
    H, L = hidden_dim, latent_dim

    LANE = 128
    Dp = max(_round_up(d, LANE) for d in dims)   # common padded view width
    Hp = _round_up(H, LANE)
    Lp = _round_up(L, LANE)
    TB = 128 if B >= 128 else _round_up(B, 8)    # batch tile (sublane aligned)
    Bp = _round_up(B, TB)
    nb = Bp // TB

    f32, bf16 = jnp.float32, jnp.bfloat16

    # Stacked, zero-padded, lane-aligned slabs (one leading view axis for tiling).
    x_s = jnp.zeros((V, Bp, Dp), bf16)
    ew1 = jnp.zeros((V, Dp, Hp), bf16)
    eb1 = jnp.zeros((V, 1, Hp), f32)
    ew2 = jnp.zeros((V, Hp, 2 * Lp), bf16)       # [:, :, :Lp]=mu head, [:, :, Lp:]=logvar head
    eb2 = jnp.zeros((V, 1, 2 * Lp), f32)
    dw1 = jnp.zeros((V, Lp, Hp), bf16)
    db1 = jnp.zeros((V, 1, Hp), f32)
    dw2 = jnp.zeros((V, Hp, Dp), bf16)
    db2 = jnp.zeros((V, 1, Dp), f32)

    for v in range(V):
        d = dims[v]
        w1, b1, w2, b2 = enc_params[v]
        x_s = x_s.at[v, :B, :d].set(views[v].astype(bf16))
        ew1 = ew1.at[v, :d, :H].set(w1.astype(bf16))
        eb1 = eb1.at[v, 0, :H].set(b1.reshape(-1))
        ew2 = ew2.at[v, :H, :L].set(w2[:, :L].astype(bf16))
        ew2 = ew2.at[v, :H, Lp:Lp + L].set(w2[:, L:].astype(bf16))
        eb2 = eb2.at[v, 0, :L].set(b2.reshape(-1)[:L])
        eb2 = eb2.at[v, 0, Lp:Lp + L].set(b2.reshape(-1)[L:])
        u1, c1, u2, c2 = dec_params[v]
        dw1 = dw1.at[v, :L, :H].set(u1.astype(bf16))
        db1 = db1.at[v, 0, :H].set(c1.reshape(-1))
        dw2 = dw2.at[v, :H, :d].set(u2.astype(bf16))
        db2 = db2.at[v, 0, :d].set(c2.reshape(-1))

    eps_p = jnp.zeros((Bp, Lp), f32).at[:B, :L].set(eps)

    # Index maps: encoder-side blocks track view g (clamped), decoder-side track g-V.
    enc_idx = lambda b, g: (jnp.minimum(g, V - 1), 0, 0)
    dec_idx = lambda b, g: (jnp.maximum(g - V, 0), 0, 0)

    in_specs = [
        pl.BlockSpec((1, TB, Dp),     lambda b, g: (jnp.minimum(g, V - 1), b, 0)),
        pl.BlockSpec((1, Dp, Hp),     enc_idx),
        pl.BlockSpec((1, 1, Hp),      enc_idx),
        pl.BlockSpec((1, Hp, 2 * Lp), enc_idx),
        pl.BlockSpec((1, 1, 2 * Lp),  enc_idx),
        pl.BlockSpec((1, Lp, Hp),     dec_idx),
        pl.BlockSpec((1, 1, Hp),      dec_idx),
        pl.BlockSpec((1, Hp, Dp),     dec_idx),
        pl.BlockSpec((1, 1, Dp),      dec_idx),
        pl.BlockSpec((TB, Lp),        lambda b, g: (b, 0)),
    ]
    out_specs = (
        pl.BlockSpec((1, TB, Dp),     lambda b, g: (jnp.maximum(g - V, 0), b, 0)),
        pl.BlockSpec((TB, 2 * Lp),    lambda b, g: (b, 0)),
    )
    out_shape = (
        jax.ShapeDtypeStruct((V, Bp, Dp), f32),
        jax.ShapeDtypeStruct((Bp, 2 * Lp), f32),
    )
    scratch_shapes = [
        pltpu.VMEM((TB, Lp), f32),   # prec_sum
        pltpu.VMEM((TB, Lp), f32),   # mu_weighted
        pltpu.VMEM((TB, Lp), f32),   # z
    ]

    # VMEM budget estimate (per-step blocks, x2 for double-buffering) + headroom.
    def nbytes(shape, itemsize):
        n = 1
        for s in shape:
            n *= s
        return n * itemsize

    block_bytes = (
        nbytes((TB, Dp), 2) + nbytes((Dp, Hp), 2) + nbytes((1, Hp), 4)
        + nbytes((Hp, 2 * Lp), 2) + nbytes((1, 2 * Lp), 4)
        + nbytes((Lp, Hp), 2) + nbytes((1, Hp), 4)
        + nbytes((Hp, Dp), 2) + nbytes((1, Dp), 4)
        + nbytes((TB, Lp), 4)
        + nbytes((TB, Dp), 4) + nbytes((TB, 2 * Lp), 4)
    )
    scratch_bytes = 3 * nbytes((TB, Lp), 4)
    vmem_limit = int(min(64 * 1024 * 1024,
                         max(16 * 1024 * 1024, 4 * block_bytes + scratch_bytes)))

    flops = 2 * Bp * V * (Dp * Hp + Hp * 2 * Lp + Lp * Hp + Hp * Dp)
    transcendentals = Bp * Lp * (V + 3)
    bytes_accessed = (
        x_s.size * 2 + ew1.size * 2 + eb1.size * 4 + ew2.size * 2 + eb2.size * 4
        + dw1.size * 2 + db1.size * 4 + dw2.size * 2 + db2.size * 4
        + eps_p.size * 4 + V * Bp * Dp * 4 + Bp * 2 * Lp * 4)

    kernel = make_clines_vae_kernel(V, Lp)
    xhat_p, mulv = pl.pallas_call(
        kernel,
        grid=(nb, 2 * V),
        in_specs=in_specs,
        out_specs=out_specs,
        out_shape=out_shape,
        scratch_shapes=scratch_shapes,
        compiler_params=pltpu.CompilerParams(
            dimension_semantics=("parallel", "arbitrary"),
            vmem_limit_bytes=vmem_limit),
        cost_estimate=pl.CostEstimate(
            flops=int(flops),
            transcendentals=int(transcendentals),
            bytes_accessed=int(bytes_accessed)),
    )(x_s, ew1, eb1, ew2, eb2, dw1, db1, dw2, db2, eps_p)

    x_hat = [xhat_p[v, :B, :dims[v]] for v in range(V)]
    mu_joint = mulv[:B, :L]
    logvar_joint = mulv[:B, Lp:Lp + L]
    return x_hat, mu_joint, logvar_joint


# ---------------------------------------------------------------------------
# Plain-JAX reference (mirrors the PyTorch module; same bf16 dot boundaries)
# ---------------------------------------------------------------------------
def reference_forward(views, enc_params, dec_params, latent_dim, eps):
    bf16 = jnp.bfloat16
    mus, logvars = [], []
    for x, (w1, b1, w2, b2) in zip(views, enc_params):
        h = jnp.dot(x.astype(bf16), w1.astype(bf16),
                    preferred_element_type=jnp.float32) + b1
        h = jnp.maximum(h, 0.0).astype(bf16)
        h2 = jnp.dot(h, w2.astype(bf16), preferred_element_type=jnp.float32) + b2
        mus.append(h2[:, :latent_dim])
        logvars.append(h2[:, latent_dim:])
    prec = [jnp.exp(-lv) for lv in logvars]
    prec_sum = sum(prec)
    logvar_joint = jnp.log(1.0 / prec_sum)
    mu_joint = sum(m * p for m, p in zip(mus, prec)) * jnp.exp(logvar_joint)
    std = jnp.exp(0.5 * logvar_joint)
    z = (mu_joint + eps * std).astype(bf16)
    x_hat = []
    for (w1, b1, w2, b2) in dec_params:
        h = jnp.maximum(jnp.dot(z, w1.astype(bf16),
                                preferred_element_type=jnp.float32) + b1, 0.0).astype(bf16)
        x_hat.append(jnp.dot(h, w2.astype(bf16),
                             preferred_element_type=jnp.float32) + b2)
    return x_hat, mu_joint, logvar_joint


# ---------------------------------------------------------------------------
# Deterministic parameter construction (PyTorch nn.Linear-style uniform init)
# ---------------------------------------------------------------------------
def linear_params(key, in_dim, out_dim):
    kw, kb = jax.random.split(key)
    bound = 1.0 / math.sqrt(in_dim)
    w = jax.random.uniform(kw, (in_dim, out_dim), jnp.float32, -bound, bound)
    b = jax.random.uniform(kb, (out_dim,), jnp.float32, -bound, bound)
    return w, b


def build_params(key, view_dims, hidden_dim, latent_dim):
    enc_params, dec_params = [], []
    for d in view_dims:
        key, k1, k2, k3, k4 = jax.random.split(key, 5)
        w1, b1 = linear_params(k1, d, hidden_dim)                # Linear(d, hidden)
        w2, b2 = linear_params(k2, hidden_dim, 2 * latent_dim)   # Linear(hidden, 2L)
        enc_params.append((w1, b1, w2, b2))
        dw1, db1 = linear_params(k3, latent_dim, hidden_dim)     # Linear(L, hidden)
        dw2, db2 = linear_params(k4, hidden_dim, d)              # Linear(hidden, d)
        dec_params.append((dw1, db1, dw2, db2))
    return enc_params, dec_params


# ---------------------------------------------------------------------------
# Main
# ---------------------------------------------------------------------------
if __name__ == "__main__":
    key = jax.random.PRNGKey(0)

    batch = 8
    hidden_dim = 32
    latent_dim = 8
    view_dims = [16, 32]   # two "views" with different feature widths

    key, kp = jax.random.split(key)
    enc_params, dec_params = build_params(kp, view_dims, hidden_dim, latent_dim)

    vkeys = jax.random.split(key, len(view_dims) + 1)
    views = [jax.random.normal(vkeys[i], (batch, d), jnp.float32)
             for i, d in enumerate(view_dims)]
    # eps plays the role of torch.randn_like(std) in reparameterize().
    eps = jax.random.normal(vkeys[-1], (batch, latent_dim), jnp.float32)

    x_hat, mu_joint, logvar_joint = clines_vae_forward(
        views, enc_params, dec_params, hidden_dim, latent_dim, eps)
    jax.block_until_ready((x_hat, mu_joint, logvar_joint))

    # Shape sanity.
    assert mu_joint.shape == (batch, latent_dim)
    assert logvar_joint.shape == (batch, latent_dim)
    assert [xh.shape for xh in x_hat] == [(batch, d) for d in view_dims]

    # Numeric check vs plain-JAX reference with matching bf16 matmul precision
    # (kernel additionally uses approx-reciprocal / rsqrt in the PoE step).
    ref_xhat, ref_mu, ref_lv = reference_forward(
        views, enc_params, dec_params, latent_dim, eps)
    max_diff = max(
        [float(jnp.max(jnp.abs(a - b))) for a, b in zip(x_hat, ref_xhat)]
        + [float(jnp.max(jnp.abs(mu_joint - ref_mu))),
           float(jnp.max(jnp.abs(logvar_joint - ref_lv)))])
    assert max_diff < 0.1, f"numeric mismatch vs reference: {max_diff}"

    print("KERNEL_OK")
</pallas_src>

<mosaic_0001>
module attributes {stable_mosaic.version = 11 : i64} {
  func.func @kernel(%arg0: i32, %arg1: i32, %arg2: memref<1x8x128xbf16, #tpu.memory_space<vmem>>, %arg3: memref<1x128x128xbf16, #tpu.memory_space<vmem>>, %arg4: memref<1x1x128xf32, #tpu.memory_space<vmem>>, %arg5: memref<1x128x256xbf16, #tpu.memory_space<vmem>>, %arg6: memref<1x1x256xf32, #tpu.memory_space<vmem>>, %arg7: memref<1x128x128xbf16, #tpu.memory_space<vmem>>, %arg8: memref<1x1x128xf32, #tpu.memory_space<vmem>>, %arg9: memref<1x128x128xbf16, #tpu.memory_space<vmem>>, %arg10: memref<1x1x128xf32, #tpu.memory_space<vmem>>, %arg11: memref<8x128xf32, #tpu.memory_space<vmem>>, %arg12: memref<1x8x128xf32, #tpu.memory_space<vmem>>, %arg13: memref<8x256xf32, #tpu.memory_space<vmem>>, %arg14: memref<8x128xf32, #tpu.memory_space<vmem>>, %arg15: memref<8x128xf32, #tpu.memory_space<vmem>>, %arg16: memref<8x128xf32, #tpu.memory_space<vmem>>) attributes {dimension_semantics = [#tpu.dimension_semantics<parallel>, #tpu.dimension_semantics<arbitrary>], iteration_bounds = array<i64: 1, 4>, scalar_prefetch = 0 : i64, scratch_operands = 3 : i64, tpu.core_type = #tpu.core_type<tc>, window_params = [{transform_indices = @transform_0, window_bounds = array<i64: 1, 8, 128>}, {transform_indices = @transform_1, window_bounds = array<i64: 1, 128, 128>}, {transform_indices = @transform_2, window_bounds = array<i64: 1, 1, 128>}, {transform_indices = @transform_3, window_bounds = array<i64: 1, 128, 256>}, {transform_indices = @transform_4, window_bounds = array<i64: 1, 1, 256>}, {transform_indices = @transform_5, window_bounds = array<i64: 1, 128, 128>}, {transform_indices = @transform_6, window_bounds = array<i64: 1, 1, 128>}, {transform_indices = @transform_7, window_bounds = array<i64: 1, 128, 128>}, {transform_indices = @transform_8, window_bounds = array<i64: 1, 1, 128>}, {transform_indices = @transform_9, window_bounds = array<i64: 8, 128>}, {transform_indices = @transform_10, window_bounds = array<i64: 1, 8, 128>}, {transform_indices = @transform_11, window_bounds = array<i64: 8, 256>}]} {
    %c0_i32 = arith.constant 0 : i32
    %0 = arith.cmpi eq, %arg1, %c0_i32 : i32
    %1 = arith.extui %0 : i1 to i32
    %c0_i32_0 = arith.constant 0 : i32
    %2 = arith.cmpi ne, %1, %c0_i32_0 : i32
    scf.if %2 {
      %cst = arith.constant 0.000000e+00 : f32
      %12 = vector.broadcast %cst : f32 to vector<8x128xf32>
      %c0 = arith.constant 0 : index
      %c0_5 = arith.constant 0 : index
      %13 = vector.load %arg14[%c0, %c0_5] : memref<8x128xf32, #tpu.memory_space<vmem>>, vector<8x128xf32>
      tpu.vector_store %arg14[%c0, %c0_5], %12 {strides = array<i32>} : memref<8x128xf32, #tpu.memory_space<vmem>>, vector<8x128xf32>,
      %cst_6 = arith.constant 0.000000e+00 : f32
      %14 = vector.broadcast %cst_6 : f32 to vector<8x128xf32>
      %c0_7 = arith.constant 0 : index
      %c0_8 = arith.constant 0 : index
      %15 = vector.load %arg15[%c0_7, %c0_8] : memref<8x128xf32, #tpu.memory_space<vmem>>, vector<8x128xf32>
      tpu.vector_store %arg15[%c0_7, %c0_8], %14 {strides = array<i32>} : memref<8x128xf32, #tpu.memory_space<vmem>>, vector<8x128xf32>,
    } else {
    }
    %c2_i32 = arith.constant 2 : i32
    %3 = arith.cmpi slt, %arg1, %c2_i32 : i32
    %4 = arith.extui %3 : i1 to i32
    %c0_i32_1 = arith.constant 0 : i32
    %5 = arith.cmpi ne, %4, %c0_i32_1 : i32
    scf.if %5 {
      %c0 = arith.constant 0 : index
      %c0_5 = arith.constant 0 : index
      %c0_6 = arith.constant 0 : index
      %12 = vector.load %arg2[%c0, %c0_5, %c0_6] : memref<1x8x128xbf16, #tpu.memory_space<vmem>>, vector<1x8x128xbf16>
      %13 = vector.shape_cast %12 : vector<1x8x128xbf16> to vector<8x128xbf16>
      %c0_7 = arith.constant 0 : index
      %c0_8 = arith.constant 0 : index
      %c0_9 = arith.constant 0 : index
      %14 = vector.load %arg3[%c0_7, %c0_8, %c0_9] : memref<1x128x128xbf16, #tpu.memory_space<vmem>>, vector<1x128x128xbf16>
      %15 = vector.shape_cast %14 : vector<1x128x128xbf16> to vector<128x128xbf16>
      %cst = arith.constant dense<0.000000e+00> : vector<8x128xf32>
      %16 = tpu.matmul %13, %15, %cst {dimension_numbers = #tpu.dot_dimension_numbers<[1], [0], [0], [1], [0, 0, 1, 1], [], []>} : vector<8x128xbf16>, vector<128x128xbf16>, vector<8x128xf32> -> vector<8x128xf32>
      %c0_10 = arith.constant 0 : index
      %c0_11 = arith.constant 0 : index
      %c0_12 = arith.constant 0 : index
      %17 = vector.load %arg4[%c0_10, %c0_11, %c0_12] : memref<1x1x128xf32, #tpu.memory_space<vmem>>, vector<1x1x128xf32>
      %18 = vector.shape_cast %17 : vector<1x1x128xf32> to vector<1x128xf32>
      %19 = vector.broadcast %18 : vector<1x128xf32> to vector<8x128xf32>
      %20 = arith.addf %16, %19 : vector<8x128xf32>
      %cst_13 = arith.constant 0.000000e+00 : f32
      %21 = vector.broadcast %cst_13 : f32 to vector<8x128xf32>
      %22 = arith.maximumf %20, %21 : vector<8x128xf32>
      %23 = arith.truncf %22 : vector<8x128xf32> to vector<8x128xbf16>
      %c0_14 = arith.constant 0 : index
      %c0_15 = arith.constant 0 : index
      %c0_16 = arith.constant 0 : index
      %24 = vector.load %arg5[%c0_14, %c0_15, %c0_16] : memref<1x128x256xbf16, #tpu.memory_space<vmem>>, vector<1x128x256xbf16>
      %25 = vector.shape_cast %24 : vector<1x128x256xbf16> to vector<128x256xbf16>
      %cst_17 = arith.constant dense<0.000000e+00> : vector<8x256xf32>
      %26 = tpu.matmul %23, %25, %cst_17 {dimension_numbers = #tpu.dot_dimension_numbers<[1], [0], [0], [1], [0, 0, 1, 1], [], []>} : vector<8x128xbf16>, vector<128x256xbf16>, vector<8x256xf32> -> vector<8x256xf32>
      %c0_18 = arith.constant 0 : index
      %c0_19 = arith.constant 0 : index
      %c0_20 = arith.constant 0 : index
      %27 = vector.load %arg6[%c0_18, %c0_19, %c0_20] : memref<1x1x256xf32, #tpu.memory_space<vmem>>, vector<1x1x256xf32>
      %28 = vector.shape_cast %27 : vector<1x1x256xf32> to vector<1x256xf32>
      %29 = vector.broadcast %28 : vector<1x256xf32> to vector<8x256xf32>
      %30 = arith.addf %26, %29 : vector<8x256xf32>
      %31 = vector.extract_strided_slice %30 {offsets = [0, 0], sizes = [8, 128], strides = [1, 1]} : vector<8x256xf32> to vector<8x128xf32>
      %32 = vector.extract_strided_slice %30 {offsets = [0, 128], sizes = [8, 128], strides = [1, 1]} : vector<8x256xf32> to vector<8x128xf32>
      %cst_21 = arith.constant 0.000000e+00 : f32
      %33 = vector.broadcast %cst_21 : f32 to vector<8x128xf32>
      %34 = arith.subf %33, %32 : vector<8x128xf32>
      %35 = math.exp %34 : vector<8x128xf32>
      %c0_22 = arith.constant 0 : index
      %c0_23 = arith.constant 0 : index
      %36 = vector.load %arg14[%c0_22, %c0_23] : memref<8x128xf32, #tpu.memory_space<vmem>>, vector<8x128xf32>
      %37 = arith.addf %36, %35 : vector<8x128xf32>
      %c0_24 = arith.constant 0 : index
      %c0_25 = arith.constant 0 : index
      %38 = vector.load %arg14[%c0_24, %c0_25] : memref<8x128xf32, #tpu.memory_space<vmem>>, vector<8x128xf32>
      tpu.vector_store %arg14[%c0_24, %c0_25], %37 {strides = array<i32>} : memref<8x128xf32, #tpu.memory_space<vmem>>, vector<8x128xf32>,
      %c0_26 = arith.constant 0 : index
      %c0_27 = arith.constant 0 : index
      %39 = vector.load %arg15[%c0_26, %c0_27] : memref<8x128xf32, #tpu.memory_space<vmem>>, vector<8x128xf32>
      %40 = arith.mulf %31, %35 : vector<8x128xf32>
      %41 = arith.addf %39, %40 : vector<8x128xf32>
      %c0_28 = arith.constant 0 : index
      %c0_29 = arith.constant 0 : index
      %42 = vector.load %arg15[%c0_28, %c0_29] : memref<8x128xf32, #tpu.memory_space<vmem>>, vector<8x128xf32>
      tpu.vector_store %arg15[%c0_28, %c0_29], %41 {strides = array<i32>} : memref<8x128xf32, #tpu.memory_space<vmem>>, vector<8x128xf32>,
    } else {
    }
    %c1_i32 = arith.constant 1 : i32
    %6 = arith.cmpi eq, %arg1, %c1_i32 : i32
    %7 = arith.extui %6 : i1 to i32
    %c0_i32_2 = arith.constant 0 : i32
    %8 = arith.cmpi ne, %7, %c0_i32_2 : i32
    scf.if %8 {
      %c0 = arith.constant 0 : index
      %c0_5 = arith.constant 0 : index
      %12 = vector.load %arg14[%c0, %c0_5] : memref<8x128xf32, #tpu.memory_space<vmem>>, vector<8x128xf32>
      %13 = tpu.reciprocal %12 {approx = true} : vector<8x128xf32> -> vector<8x128xf32>
      %c0_6 = arith.constant 0 : index
      %c0_7 = arith.constant 0 : index
      %14 = vector.load %arg15[%c0_6, %c0_7] : memref<8x128xf32, #tpu.memory_space<vmem>>, vector<8x128xf32>
      %15 = arith.mulf %14, %13 : vector<8x128xf32>
      %16 = math.log %12 : vector<8x128xf32>
      %cst = arith.constant 0.000000e+00 : f32
      %17 = vector.broadcast %cst : f32 to vector<8x128xf32>
      %18 = arith.subf %17, %16 : vector<8x128xf32>
      %19 = math.rsqrt %12 : vector<8x128xf32>
      %c0_8 = arith.constant 0 : index
      %c0_9 = arith.constant 0 : index
      %20 = vector.load %arg11[%c0_8, %c0_9] : memref<8x128xf32, #tpu.memory_space<vmem>>, vector<8x128xf32>
      %21 = arith.mulf %20, %19 : vector<8x128xf32>
      %22 = arith.addf %15, %21 : vector<8x128xf32>
      %c0_10 = arith.constant 0 : index
      %c0_11 = arith.constant 0 : index
      %23 = vector.load %arg16[%c0_10, %c0_11] : memref<8x128xf32, #tpu.memory_space<vmem>>, vector<8x128xf32>
      tpu.vector_store %arg16[%c0_10, %c0_11], %22 {strides = array<i32>} : memref<8x128xf32, #tpu.memory_space<vmem>>, vector<8x128xf32>,
      %24 = tpu.concatenate %15, %18 in 1 : vector<8x128xf32>, vector<8x128xf32> -> vector<8x256xf32>
      %c0_12 = arith.constant 0 : index
      %c0_13 = arith.constant 0 : index
      %25 = vector.load %arg13[%c0_12, %c0_13] : memref<8x256xf32, #tpu.memory_space<vmem>>, vector<8x256xf32>
      tpu.vector_store %arg13[%c0_12, %c0_13], %24 {strides = array<i32>} : memref<8x256xf32, #tpu.memory_space<vmem>>, vector<8x256xf32>,
    } else {
    }
    %c2_i32_3 = arith.constant 2 : i32
    %9 = arith.cmpi sge, %arg1, %c2_i32_3 : i32
    %10 = arith.extui %9 : i1 to i32
    %c0_i32_4 = arith.constant 0 : i32
    %11 = arith.cmpi ne, %10, %c0_i32_4 : i32
    scf.if %11 {
      %c0 = arith.constant 0 : index
      %c0_5 = arith.constant 0 : index
      %12 = vector.load %arg16[%c0, %c0_5] : memref<8x128xf32, #tpu.memory_space<vmem>>, vector<8x128xf32>
      %13 = arith.truncf %12 : vector<8x128xf32> to vector<8x128xbf16>
      %c0_6 = arith.constant 0 : index
      %c0_7 = arith.constant 0 : index
      %c0_8 = arith.constant 0 : index
      %14 = vector.load %arg7[%c0_6, %c0_7, %c0_8] : memref<1x128x128xbf16, #tpu.memory_space<vmem>>, vector<1x128x128xbf16>
      %15 = vector.shape_cast %14 : vector<1x128x128xbf16> to vector<128x128xbf16>
      %cst = arith.constant dense<0.000000e+00> : vector<8x128xf32>
      %16 = tpu.matmul %13, %15, %cst {dimension_numbers = #tpu.dot_dimension_numbers<[1], [0], [0], [1], [0, 0, 1, 1], [], []>} : vector<8x128xbf16>, vector<128x128xbf16>, vector<8x128xf32> -> vector<8x128xf32>
      %c0_9 = arith.constant 0 : index
      %c0_10 = arith.constant 0 : index
      %c0_11 = arith.constant 0 : index
      %17 = vector.load %arg8[%c0_9, %c0_10, %c0_11] : memref<1x1x128xf32, #tpu.memory_space<vmem>>, vector<1x1x128xf32>
      %18 = vector.shape_cast %17 : vector<1x1x128xf32> to vector<1x128xf32>
      %19 = vector.broadcast %18 : vector<1x128xf32> to vector<8x128xf32>
      %20 = arith.addf %16, %19 : vector<8x128xf32>
      %cst_12 = arith.constant 0.000000e+00 : f32
      %21 = vector.broadcast %cst_12 : f32 to vector<8x128xf32>
      %22 = arith.maximumf %20, %21 : vector<8x128xf32>
      %23 = arith.truncf %22 : vector<8x128xf32> to vector<8x128xbf16>
      %c0_13 = arith.constant 0 : index
      %c0_14 = arith.constant 0 : index
      %c0_15 = arith.constant 0 : index
      %24 = vector.load %arg9[%c0_13, %c0_14, %c0_15] : memref<1x128x128xbf16, #tpu.memory_space<vmem>>, vector<1x128x128xbf16>
      %25 = vector.shape_cast %24 : vector<1x128x128xbf16> to vector<128x128xbf16>
      %cst_16 = arith.constant dense<0.000000e+00> : vector<8x128xf32>
      %26 = tpu.matmul %23, %25, %cst_16 {dimension_numbers = #tpu.dot_dimension_numbers<[1], [0], [0], [1], [0, 0, 1, 1], [], []>} : vector<8x128xbf16>, vector<128x128xbf16>, vector<8x128xf32> -> vector<8x128xf32>
      %c0_17 = arith.constant 0 : index
      %c0_18 = arith.constant 0 : index
      %c0_19 = arith.constant 0 : index
      %27 = vector.load %arg10[%c0_17, %c0_18, %c0_19] : memref<1x1x128xf32, #tpu.memory_space<vmem>>, vector<1x1x128xf32>
      %28 = vector.shape_cast %27 : vector<1x1x128xf32> to vector<1x128xf32>
      %29 = vector.broadcast %28 : vector<1x128xf32> to vector<8x128xf32>
      %30 = arith.addf %26, %29 : vector<8x128xf32>
      %c0_20 = arith.constant 0 : index
      %c0_21 = arith.constant 0 : index
      %c0_22 = arith.constant 0 : index
      %31 = vector.load %arg12[%c0_20, %c0_21, %c0_22] : memref<1x8x128xf32, #tpu.memory_space<vmem>>, vector<1x8x128xf32>
      %32 = vector.shape_cast %31 : vector<1x8x128xf32> to vector<8x128xf32>
      %33 = vector.shape_cast %30 : vector<8x128xf32> to vector<1x8x128xf32>
      tpu.vector_store %arg12[%c0_20, %c0_21, %c0_22], %33 {strides = array<i32>} : memref<1x8x128xf32, #tpu.memory_space<vmem>>, vector<1x8x128xf32>,
    } else {
    }
    return
  }
  func.func @transform_0(%arg0: i32, %arg1: i32) -> (i32, i32, i32) {
    %c1_i32 = arith.constant 1 : i32
    %0 = arith.minsi %arg1, %c1_i32 : i32
    %c0_i32 = arith.constant 0 : i32
    %c0_i32_0 = arith.constant 0 : i32
    return %0, %arg0, %c0_i32 : i32, i32, i32
  }
  func.func @transform_1(%arg0: i32, %arg1: i32) -> (i32, i32, i32) {
    %c1_i32 = arith.constant 1 : i32
    %0 = arith.minsi %arg1, %c1_i32 : i32
    %c0_i32 = arith.constant 0 : i32
    %c0_i32_0 = arith.constant 0 : i32
    %c0_i32_1 = arith.constant 0 : i32
    return %0, %c0_i32, %c0_i32_0 : i32, i32, i32
  }
  func.func @transform_2(%arg0: i32, %arg1: i32) -> (i32, i32, i32) {
    %c1_i32 = arith.constant 1 : i32
    %0 = arith.minsi %arg1, %c1_i32 : i32
    %c0_i32 = arith.constant 0 : i32
    %c0_i32_0 = arith.constant 0 : i32
    %c0_i32_1 = arith.constant 0 : i32
    return %0, %c0_i32, %c0_i32_0 : i32, i32, i32
  }
  func.func @transform_3(%arg0: i32, %arg1: i32) -> (i32, i32, i32) {
    %c1_i32 = arith.constant 1 : i32
    %0 = arith.minsi %arg1, %c1_i32 : i32
    %c0_i32 = arith.constant 0 : i32
    %c0_i32_0 = arith.constant 0 : i32
    %c0_i32_1 = arith.constant 0 : i32
    return %0, %c0_i32, %c0_i32_0 : i32, i32, i32
  }
  func.func @transform_4(%arg0: i32, %arg1: i32) -> (i32, i32, i32) {
    %c1_i32 = arith.constant 1 : i32
    %0 = arith.minsi %arg1, %c1_i32 : i32
    %c0_i32 = arith.constant 0 : i32
    %c0_i32_0 = arith.constant 0 : i32
    %c0_i32_1 = arith.constant 0 : i32
    return %0, %c0_i32, %c0_i32_0 : i32, i32, i32
  }
  func.func @transform_5(%arg0: i32, %arg1: i32) -> (i32, i32, i32) {
    %c2_i32 = arith.constant 2 : i32
    %0 = arith.subi %arg1, %c2_i32 : i32
    %c0_i32 = arith.constant 0 : i32
    %1 = arith.maxsi %0, %c0_i32 : i32
    %c0_i32_0 = arith.constant 0 : i32
    %c0_i32_1 = arith.constant 0 : i32
    %c0_i32_2 = arith.constant 0 : i32
    return %1, %c0_i32_0, %c0_i32_1 : i32, i32, i32
  }
  func.func @transform_6(%arg0: i32, %arg1: i32) -> (i32, i32, i32) {
    %c2_i32 = arith.constant 2 : i32
    %0 = arith.subi %arg1, %c2_i32 : i32
    %c0_i32 = arith.constant 0 : i32
    %1 = arith.maxsi %0, %c0_i32 : i32
    %c0_i32_0 = arith.constant 0 : i32
    %c0_i32_1 = arith.constant 0 : i32
    %c0_i32_2 = arith.constant 0 : i32
    return %1, %c0_i32_0, %c0_i32_1 : i32, i32, i32
  }
  func.func @transform_7(%arg0: i32, %arg1: i32) -> (i32, i32, i32) {
    %c2_i32 = arith.constant 2 : i32
    %0 = arith.subi %arg1, %c2_i32 : i32
    %c0_i32 = arith.constant 0 : i32
    %1 = arith.maxsi %0, %c0_i32 : i32
    %c0_i32_0 = arith.constant 0 : i32
    %c0_i32_1 = arith.constant 0 : i32
    %c0_i32_2 = arith.constant 0 : i32
    return %1, %c0_i32_0, %c0_i32_1 : i32, i32, i32
  }
  func.func @transform_8(%arg0: i32, %arg1: i32) -> (i32, i32, i32) {
    %c2_i32 = arith.constant 2 : i32
    %0 = arith.subi %arg1, %c2_i32 : i32
    %c0_i32 = arith.constant 0 : i32
    %1 = arith.maxsi %0, %c0_i32 : i32
    %c0_i32_0 = arith.constant 0 : i32
    %c0_i32_1 = arith.constant 0 : i32
    %c0_i32_2 = arith.constant 0 : i32
    return %1, %c0_i32_0, %c0_i32_1 : i32, i32, i32
  }
  func.func @transform_9(%arg0: i32, %arg1: i32) -> (i32, i32) {
    %c0_i32 = arith.constant 0 : i32
    %c0_i32_0 = arith.constant 0 : i32
    return %arg0, %c0_i32 : i32, i32
  }
  func.func @transform_10(%arg0: i32, %arg1: i32) -> (i32, i32, i32) {
    %c2_i32 = arith.constant 2 : i32
    %0 = arith.subi %arg1, %c2_i32 : i32
    %c0_i32 = arith.constant 0 : i32
    %1 = arith.maxsi %0, %c0_i32 : i32
    %c0_i32_0 = arith.constant 0 : i32
    %c0_i32_1 = arith.constant 0 : i32
    return %1, %arg0, %c0_i32_0 : i32, i32, i32
  }
  func.func @transform_11(%arg0: i32, %arg1: i32) -> (i32, i32) {
    %c0_i32 = arith.constant 0 : i32
    %c0_i32_0 = arith.constant 0 : i32
    return %arg0, %c0_i32 : i32, i32
  }
}

</mosaic_0001>

<bundles_post_ra>
// kernel: tpu_custom_call.1
= control target key start
LH: loop header
LB: loop body
LE: loop exit
PB: predicated region body
PF: predicated region fallthrough
CT: control target
= control target key end

     0   :  { %s2873_s0 = inlined_call_operand.hbm [shape: bf16[2,8,128], index: 0, kind: input, shape index: {}]   ;;  %s2874_s1 = inlined_call_operand.hbm [shape: bf16[2,128,128], index: 1, kind: input, shape index: {}]   ;;  %s2875_s2 = inlined_call_operand.vmem [shape: f32[2,1,128], index: 2, kind: input, shape index: {}]   ;;  %s2876_s3 = inlined_call_operand.hbm [shape: bf16[2,128,256], index: 3, kind: input, shape index: {}]   ;;  %s2877_s4 = inlined_call_operand.vmem [shape: f32[2,1,256], index: 4, kind: input, shape index: {}]   ;;  %s2878_s5 = inlined_call_operand.hbm [shape: bf16[2,128,128], index: 5, kind: input, shape index: {}]   ;;  %s2879_s6 = inlined_call_operand.vmem [shape: f32[2,1,128], index: 6, kind: input, shape index: {}]   ;;  %s2880_s7 = inlined_call_operand.hbm [shape: bf16[2,128,128], index: 7, kind: input, shape index: {}]   ;;  %s2881_s8 = inlined_call_operand.vmem [shape: f32[2,1,128], index: 8, kind: input, shape index: {}]   ;;  %s2882_s9 = inlined_call_operand.vmem [shape: f32[8,128], index: 9, kind: input, shape index: {}]   ;;  %s2883_s10 = inlined_call_operand.hbm [shape: f32[2,8,128], index: 10, kind: output, shape index: {0}]   ;;  %s2884_s11 = inlined_call_operand.hbm [shape: f32[8,256], index: 11, kind: output, shape index: {1}]  }
   0x1   :  { %2916 = sst [smem:[#allocation34_spill]] %s2873_s0 }
   0x2   :  { %2917 = sst [smem:[#allocation35_spill]] %s2874_s1 }
   0x3   :  { %2918 = sst [smem:[#allocation36_spill]] %s2875_s2 }
   0x4   :  { %2919 = sst [smem:[#allocation37_spill]] %s2876_s3 }
   0x5   :  { %2920 = sst [smem:[#allocation38_spill]] %s2877_s4 }
   0x6   :  { %2921 = sst [smem:[#allocation39_spill]] %s2878_s5 }
   0x7   :  { %2922 = sst [smem:[#allocation40_spill]] %s2879_s6 }
   0x8   :  { %2923 = sst [smem:[#allocation41_spill]] %s2881_s8 }
   0x9   :  { %2924 = sst [smem:[#allocation42_spill]] %s2882_s9 }
   0xa   :  { %2925 = sst [smem:[#allocation43_spill]] %s2883_s10 }
   0xb   :  { %2926 = sst [smem:[#allocation44_spill]] %s2884_s11 }
   0xc   :  { %17 = vsyncpa [#allocation6], 0 }
   0xd   :  { %19 = vsyncpa [#allocation6 + $0x1], 0 }
   0xe   :  { %20 = vsyncpa [#allocation9], 0 }
   0xf   :  { %22 = vsyncpa [#allocation9 + $0x1], 0 }
  0x10   :  { %23 = vsyncpa [#allocation12], 0 }
  0x11   :  { %25 = vsyncpa [#allocation12 + $0x1], 0 }
  0x12   :  { %26 = vsyncpa [#allocation7], 0 }
  0x13   :  { %28 = vsyncpa [#allocation7 + $0x1], 0 }
  0x14   :  { %29 = vsyncpa [#allocation16], 0  ;;  %s2336_s17 = smov 0   ;;  %s2338_s18 = smov 0  }
  0x15   :  { %s2340_s19 = smov 0   ;;  %s2342_s20 = smov 0  }
  0x16   :  { %s2344_s21 = smov 0   ;;  %s2346_s22 = smov 0  }
  0x17   :  { %s2348_s23 = smov 0   ;;  %s2350_s24 = smov 0  }
  0x18   :  { %s2352_s25 = smov 0  }
  0x19 LB: > { %2927 = sst [smem:[#allocation22_spill]] %s2225_s17  ;;  %p51_p0 = scmp.lt.s32.totalorder %s2253_s24, 1  ;;  %s2257_s25 = sphi %s2352_s25, %s35_s25   ;;  %s2253_s24 = sphi %s2350_s24, %s3000_s24   ;;  %s2249_s23 = sphi %s2348_s23, %s2999_s23   ;;  %s2245_s22 = sphi %s2346_s22, %s2998_s22   ;;  %s2241_s21 = sphi %s2344_s21, %s3004_s21   ;;  %s2237_s20 = sphi %s2342_s20, %s3003_s20   ;;  %s2233_s19 = sphi %s2340_s19, %s2996_s19   ;;  %s2229_s18 = sphi %s2338_s18, %s3002_s18   ;;  %s2225_s17 = sphi %s2336_s17, %s3001_s17  }
  0x1a   : > { %2928 = sst [smem:[#allocation23_spill]] %s2233_s19  ;;  %p67_p1 = scmp.ne.s32.totalorder %s2245_s22, %s2241_s21 }
  0x1b   : > { %2929 = sst [smem:[#allocation24_spill]] %s2245_s22  ;;  %p2889_p2 = scmp.eq.s32.totalorder %s2257_s25, 0 }
  0x1c   : > { %2930 = sst [smem:[#allocation25_spill]] %s2249_s23  ;;  %p2887_p5 = scmp.lt.s32.totalorder %s2257_s25, 4 }
  0x1d   : > { %2931 = sst [smem:[#allocation26_spill]] %s2253_s24  ;;  %p69_p3 = por %p2889_p2, %p67_p1 }
  0x1e   : > { %2932 = sst [smem:[#allocation27_spill]] %s2257_s25  ;;  %s2395_s28 = sand.u32 1, %s2245_s22  }
  0x1f   : > { %s2387_s27 = scalar_select %p51_p0, %s2253_s24, 1 }
  0x20   : > { %s2888_s29 = sand.u32 1, %s2257_s25   ;;  %p2400_p6 = pnand %p2887_p5, %p69_p3 }
  0x21   : > { %s1595_s12 = sshll.u32 %s2395_s28, 6  ;;  %s1689_s13 = sshll.u32 %s2387_s27, 10 }
  0x22   : > { %s2933_s30 = scalar_select %p2400_p6, 1, 0 }
  0x23   : > { %s2934_s1 = sld [smem:[#allocation35_spill]]  ;;  %s463_s26 = scalar_lea.vmem [#allocation8], %s1595_s12 }
  0x24   : > { %s472_s11 = sshll.u32 %s463_s26, 4  ;;  %s2416_s10 = scalar_lea.sflag [#allocation9], %s2888_s29  ;;  %s2411_s11 = int_to_ptr.vmem [resolvable:$true] %s472_s11 }
  0x25   : > { %p2422_p9 = pneg %p2400_p6 }
  0x29   : > { %s2409_s16 = scalar_lea.hbm %s2934_s1, %s1689_s13  ;;  %s1968_s26 = scalar_lea.hbm %s2934_s1, 2048 }
  0x2a   : > { %s1963_s9 = scalar_lea.hbm %s2409_s16, 1024  ;;  %p1969_p12 = scmp.lt.u32.totalorder %s2409_s16, %s2934_s1 }
  0x2b   : > { %p1964_p8 = scmp.ne.s32.totalorder %s2409_s16, %s1963_s9  ;;  %p1970_p13 = scmp.lt.u32.totalorder %s1968_s26, %s1963_s9 }
  0x2c   : > { %p1972_p1 = scmp.lt.u32.totalorder %s1963_s9, %s2409_s16 }
  0x2d   : > { %p1966_p10 = pnand %p2422_p9, %p1964_p8  ;;  %p1971_p0 = por %p1970_p13, %p1969_p12 }
  0x2f   : > { %p1967_p11 = pneg %p1966_p10  ;;  %p1973_p3 = por %p1972_p1, %p1971_p0 }
  0x31   : > { %p1974_p5 = pnand %p1973_p3, %p1967_p11 }
  0x33   : > { %1977 = shalt.err (!%p1974_p5)
}
  0x34   : > { %s1978_s29 = scalar_lea.vmem %s2411_s11, 1024  ;;  %s2259_s13 = smov [#allocation8]  }
  0x35   : > { %p1979_p8 = scmp.ne.s32.totalorder %s2411_s11, %s1978_s29  ;;  %s1983_s12 = sshll.u32 %s2259_s13, 4  ;;  %s1984_s12 = int_to_ptr.vmem [resolvable:$false] %s1983_s12 }
  0x36   : > { %s1985_s14 = scalar_lea.vmem %s1984_s12, 2048  ;;  %p1986_p4 = scmp.lt.s32.totalorder %s2411_s11, %s1984_s12 }
  0x37   : > { %p1981_p10 = pnand %p1979_p8, %p2422_p9  ;;  %p1987_p7 = scmp.lt.s32.totalorder %s1985_s14, %s1978_s29 }
  0x39   : > { %p1982_p2 = pneg %p1981_p10  ;;  %p1988_p12 = por %p1987_p7, %p1986_p4 }
  0x3b   : > { %p1989_p13 = pnand %p1988_p12, %p1982_p2 }
  0x3d   : > { %1992 = shalt.err (!%p1989_p13)
}
  0x3e   : > { %s2890_s9 = smov 64   ;;  %s2892_s26 = smov 4  }
  0x3f   : > { %1806 = dma.hbm_to_vmem [thread:$0]  (!%p2400_p6), %s2409_s16, 1024, %s2411_s11, %s2416_s10, %s2890_s9, %s2890_s9, %s2892_s26  }
  0x40   : > { %p596_p2 = scmp.lt.s32.totalorder %s2257_s25, 5  ;;  %p2936_p4 = scmp.ge.s32.totalorder %s2257_s25, 1 }
  0x41   : > { %s2457_s15 = sadd.s32 4294967295, %s2257_s25   ;;  %s1579_s13 = sadd.s32 4294967294, %s2257_s25  }
  0x42   : > { %p2452_p5 = pnand %p2936_p4, %p596_p2  ;;  %s44_s12 = sadd.s32 1, %s2253_s24 }
  0x43   : > { %p74_p7 = scmp.eq.s32.totalorder %s2457_s15, 0  ;;  %p45_p11 = scmp.ge.s32.totalorder %s44_s12, 4 }
  0x44   : > { %s2937_s29 = scalar_select %p2452_p5, 1, 0 }
  0x45   : > { %s1580_s14 = sadd.s32 4294967294, %s2253_s24  ;;  %p2938_p0 = scmp.ne.s32.totalorder %s2241_s21, %s2237_s20 }
  0x46   : > { %p204_p3 = scmp.gt.s32.totalorder %s1580_s14, 0  ;;  %s3006_s12 = smov (%p45_p11, %s44_s12), 0 }
  0x47   : > { %p2468_p1 = por %p74_p7, %p2938_p0  ;;  %2940 = sst [smem:[#allocation28_spill]] %s3006_s12 }
  0x48   : > { %s3008_s14 = smov (!%p204_p3, %s1580_s14), 0  ;;  %p53_p8 = scmp.lt.s32.totalorder %s3006_s12, 1 }
  0x49   : > { %s2939_s11 = scalar_select %p2468_p1, 1, 0 }
  0x4a   : > { %s1581_s20 = sadd.s32 4294967294, %s3006_s12  ;;  %s212_s16 = sadd.s32 1, %s2233_s19 }
  0x4b   : > { %p207_p10 = scmp.gt.s32.totalorder %s1581_s20, 0  ;;  %p219_p12 = scmp.ne.s32.totalorder %s2233_s19, %s2229_s18 }
  0x4c   : > { %s54_s9 = scalar_select %p53_p8, %s3006_s12, 1 }
  0x4d   : > { %s3010_s20 = smov (!%p207_p10, %s1581_s20), 0  ;;  %p2941_p4 = scmp.eq.s32.totalorder %s2257_s25, 0 }
  0x4e   : > { %s55_s26 = ssub.s32 %s2387_s27, %s54_s9  ;;  %s209_s1 = ssub.s32 %s3008_s14, %s3010_s20 }
  0x4f   : > { %p58_p13 = scmp.eq.s32.totalorder %s55_s26, 0  ;;  %p210_p2 = scmp.eq.s32.totalorder %s209_s1, 0 }
  0x50   : > { %p2486_p11 = por %p219_p12, %p2941_p4  ;;  %s2943_s6 = sadd.s32 1, %s2245_s22 }
  0x51   : > { %s2493_s4 = scalar_select %p58_p13, %s2245_s22, %s2943_s6  }
  0x52   : > { %s2496_s2 = scalar_select %p210_p2, %s2233_s19, %s212_s16  }
  0x53   : > { %2944 = sst [smem:[#allocation29_spill]] %s2493_s4  ;;  %p225_p0 = scmp.ne.s32.totalorder %s2229_s18, %s2225_s17 }
  0x54   : > { %2945 = sst [smem:[#allocation30_spill]] %s2496_s2  ;;  %p2906_p3 = scmp.eq.s32.totalorder %s2457_s15, 3 }
  0x55   : > { %p385_p8 = scmp.eq.s32.totalorder %s1579_s13, 3  ;;  %p2503_p10 = por %p225_p0, %p74_p7 }
  0x56   : > { %p2509_p4 = por %p2906_p3, %p219_p12  ;;  %s528_s6 = sand.u32 1, %s2233_s19  }
  0x57   : > { %s2946_s9 = scalar_select %p2503_p10, 1, 0 }
  0x58   : > { %s2948_s1 = scalar_select %p2509_p4, 1, 0 }
  0x59   : > { %2947 = sst [smem:[#allocation31_spill]] %s2946_s9  ;;  %p2513_p1 = por %p385_p8, %p225_p0 }
  0x5a   : > { %2949 = sst [smem:[#allocation32_spill]] %s2948_s1  ;;  %s2518_s20 = sshll.u32 %s528_s6, 6 }
  0x5b   : > { %s2950_s26 = scalar_select %p2513_p1, 1, 0 }
  0x5c   : > { %s1691_s16 = sshll.u32 %s3008_s14, 10  ;;  %s2952_s5 = sld [smem:[#allocation39_spill]] }
  0x5d   : > { %2951 = sst [smem:[#allocation33_spill]] %s2950_s26  ;;  %s530_s22 = scalar_lea.vmem [#allocation11], %s2518_s20 }
  0x5e   : > { %s540_s2 = sshll.u32 %s530_s22, 4  ;;  %p2953_p7 = scmp.lt.s32.totalorder %s2257_s25, 4  ;;  %s2535_s2 = int_to_ptr.vmem [resolvable:$true] %s540_s2 }
  0x5f   : > { %s2540_s6 = scalar_lea.hbm %s2880_s7, %s1691_s16  ;;  %s2955_s13 = sand.u32 1, %s2257_s25  }
  0x60   : > { %p2531_p12 = pnand %p2953_p7, %p2486_p11  ;;  %s2544_s19 = scalar_lea.sflag [#allocation12], %s2955_s13 }
  0x62   : > { %s2524_s4 = scalar_lea.hbm %s2952_s5, %s1691_s16  ;;  %p2913_p2 = pneg %p2531_p12 }
  0x63   : > { %s2954_s26 = scalar_select %p2531_p12, 1, 0 }
  0x64   : > { %s1993_s17 = scalar_lea.hbm %s2524_s4, 1024  ;;  %s1998_s1 = scalar_lea.hbm %s2952_s5, 2048 }
  0x65   : > { %p1994_p13 = scmp.ne.s32.totalorder %s2524_s4, %s1993_s17  ;;  %p1999_p8 = scmp.lt.u32.totalorder %s2524_s4, %s2952_s5 }
  0x66   : > { %p2000_p7 = scmp.lt.u32.totalorder %s1998_s1, %s1993_s17  ;;  %p2002_p1 = scmp.lt.u32.totalorder %s1993_s17, %s2524_s4 }
  0x67   : > { %p1996_p11 = pnand %p2913_p2, %p1994_p13 }
  0x68   : > { %p2001_p3 = por %p2000_p7, %p1999_p8 }
  0x69   : > { %p1997_p0 = pneg %p1996_p11 }
  0x6a   : > { %p2003_p4 = por %p2002_p1, %p2001_p3 }
  0x6c   : > { %p2004_p10 = pnand %p2003_p4, %p1997_p0 }
  0x6e   : > { %2007 = shalt.err (!%p2004_p10)
}
  0x6f   : > { %s2008_s16 = scalar_lea.vmem %s2535_s2, 1024  ;;  %s2262_s14 = smov [#allocation11]  }
  0x70   : > { %p2009_p13 = scmp.ne.s32.totalorder %s2535_s2, %s2008_s16  ;;  %s2013_s12 = sshll.u32 %s2262_s14, 4  ;;  %s2014_s12 = int_to_ptr.vmem [resolvable:$false] %s2013_s12 }
  0x71   : > { %s2015_s23 = scalar_lea.vmem %s2014_s12, 2048  ;;  %p2016_p6 = scmp.lt.s32.totalorder %s2535_s2, %s2014_s12 }
  0x72   : > { %p2011_p11 = pnand %p2009_p13, %p2913_p2  ;;  %p2017_p8 = scmp.lt.s32.totalorder %s2015_s23, %s2008_s16 }
  0x74   : > { %p2012_p5 = pneg %p2011_p11  ;;  %p2018_p7 = por %p2017_p8, %p2016_p6 }
  0x76   : > { %p2019_p1 = pnand %p2018_p7, %p2012_p5 }
  0x78   : > { %2022 = shalt.err (!%p2019_p1)
}
  0x79   : > { %s2956_s17 = smov 4   ;;  %s2957_s9 = smov 64  }
  0x7a   : > { %1812 = dma.hbm_to_vmem [thread:$0]  (!%p2531_p12), %s2524_s4, 1024, %s2535_s2, %s2544_s19, %s2957_s9, %s2957_s9, %s2956_s17  }
  0x7b   : > { %s566_s1 = scalar_lea.vmem [#allocation13], %s2518_s20  ;;  %s1593_s22 = sshll.u32 %s2395_s28, 2 }
  0x7c   : > { %s576_s13 = sshll.u32 %s566_s1, 4  ;;  %s1594_s24 = sshll.u32 %s2387_s27, 6  ;;  %s2576_s13 = int_to_ptr.vmem [resolvable:$true] %s576_s13 }
  0x7d   : > { %s2958_s0 = sld [smem:[#allocation34_spill]]  ;;  %s442_s23 = scalar_lea.vmem [#allocation5], %s1593_s22 }
  0x7e   : > { %s452_s5 = sshll.u32 %s442_s23, 4  ;;  %s1598_s2 = sshll.u32 %s2395_s28, 7  ;;  %s2585_s5 = int_to_ptr.vmem [resolvable:$true] %s452_s5 }
  0x7f   : > { %s439_s4 = scalar_lea.sflag [#allocation6], %s2395_s28 }
  0x83   : > { %s2583_s12 = scalar_lea.hbm %s2958_s0, %s1594_s24  ;;  %s2028_s24 = scalar_lea.hbm %s2958_s0, 128 }
  0x84   : > { %s2023_s20 = scalar_lea.hbm %s2583_s12, 64  ;;  %p2029_p10 = scmp.lt.u32.totalorder %s2583_s12, %s2958_s0 }
  0x85   : > { %p2024_p6 = scmp.ne.s32.totalorder %s2583_s12, %s2023_s20  ;;  %p2030_p4 = scmp.lt.u32.totalorder %s2028_s24, %s2023_s20 }
  0x86   : > { %p2032_p13 = scmp.lt.u32.totalorder %s2023_s20, %s2583_s12 }
  0x87   : > { %p2026_p5 = pnand %p2024_p6, %p2422_p9  ;;  %p2031_p0 = por %p2030_p4, %p2029_p10 }
  0x89   : > { %p2027_p3 = pneg %p2026_p5  ;;  %p2033_p11 = por %p2032_p13, %p2031_p0 }
  0x8b   : > { %p2034_p8 = pnand %p2033_p11, %p2027_p3 }
  0x8d   : > { %2037 = shalt.err (!%p2034_p8)
}
  0x8e   : > { %s2038_s22 = scalar_lea.vmem %s2585_s5, 64  ;;  %s2263_s25 = smov [#allocation5]  }
  0x8f   : > { %p2039_p7 = scmp.ne.s32.totalorder %s2585_s5, %s2038_s22  ;;  %s2043_s23 = sshll.u32 %s2263_s25, 4  ;;  %s2044_s23 = int_to_ptr.vmem [resolvable:$false] %s2043_s23 }
  0x90   : > { %s2045_s1 = scalar_lea.vmem %s2044_s23, 128  ;;  %p2046_p5 = scmp.lt.s32.totalorder %s2585_s5, %s2044_s23 }
  0x91   : > { %p2041_p1 = pnand %p2039_p7, %p2422_p9  ;;  %p2047_p2 = scmp.lt.s32.totalorder %s2045_s1, %s2038_s22 }
  0x93   : > { %p2042_p6 = pneg %p2041_p1  ;;  %p2048_p10 = por %p2047_p2, %p2046_p5 }
  0x95   : > { %p2049_p4 = pnand %p2048_p10, %p2042_p6 }
  0x97   : > { %2052 = shalt.err (!%p2049_p4)
}
  0x98   : > { %p2959_p3 = scmp.ne.s32.totalorder %s2933_s30, 0  ;;  %s1690_s20 = sshll.u32 %s2387_s27, 11 }
  0x99   : > { %s2960_s3 = sld [smem:[#allocation37_spill]]  ;;  %s496_s22 = scalar_lea.vmem [#allocation10], %s1598_s2 }
  0x9a   : > { %1803 = dma.hbm_to_vmem [thread:$0]  (!%p2959_p3), %s2583_s12, 64, %s2585_s5, %s439_s4  }
  0x9b   : > { %s505_s25 = sshll.u32 %s496_s22, 4  ;;  %s2618_s25 = int_to_ptr.vmem [resolvable:$true] %s505_s25 }
  0x9f   : > { %s2614_s14 = scalar_lea.hbm %s2960_s3, %s1690_s20  ;;  %s2058_s12 = scalar_lea.hbm %s2960_s3, 4096 }
  0xa0   : > { %s2053_s23 = scalar_lea.hbm %s2614_s14, 2048  ;;  %p2059_p11 = scmp.lt.u32.totalorder %s2614_s14, %s2960_s3 }
  0xa1   : > { %p2054_p2 = scmp.ne.s32.totalorder %s2614_s14, %s2053_s23  ;;  %p2060_p8 = scmp.lt.u32.totalorder %s2058_s12, %s2053_s23 }
  0xa2   : > { %p2062_p1 = scmp.lt.u32.totalorder %s2053_s23, %s2614_s14 }
  0xa3   : > { %p2056_p0 = pnand %p2054_p2, %p2422_p9  ;;  %p2061_p7 = por %p2060_p8, %p2059_p11 }
  0xa5   : > { %p2057_p13 = pneg %p2056_p0  ;;  %p2063_p6 = por %p2062_p1, %p2061_p7 }
  0xa7   : > { %p2064_p5 = pnand %p2063_p6, %p2057_p13 }
  0xa9   : > { %2067 = shalt.err (!%p2064_p5)
}
  0xaa   : > { %s2068_s28 = scalar_lea.vmem %s2618_s25, 2048  ;;  %s2264_s2 = smov [#allocation10]  }
  0xab   : > { %p2069_p10 = scmp.ne.s32.totalorder %s2618_s25, %s2068_s28  ;;  %s2073_s20 = sshll.u32 %s2264_s2, 4  ;;  %s2074_s20 = int_to_ptr.vmem [resolvable:$false] %s2073_s20 }
  0xac   : > { %s2075_s24 = scalar_lea.vmem %s2074_s20, 4096  ;;  %p2076_p0 = scmp.lt.s32.totalorder %s2618_s25, %s2074_s20 }
  0xad   : > { %p2071_p4 = pnand %p2069_p10, %p2422_p9  ;;  %p2077_p12 = scmp.lt.s32.totalorder %s2075_s24, %s2068_s28 }
  0xaf   : > { %p2072_p2 = pneg %p2071_p4  ;;  %p2078_p11 = por %p2077_p12, %p2076_p0 }
  0xb1   : > { %p2079_p8 = pnand %p2078_p11, %p2072_p2 }
  0xb3   : > { %2082 = shalt.err (!%p2079_p8)
}
  0xb4   : > { %s2265_s16 = smov 128   ;;  %s2266_s8 = smov 8  }
  0xb5   : > { %1809 = dma.hbm_to_vmem [thread:$0]  (!%p2959_p3), %s2614_s14, 2048, %s2618_s25, %s2416_s10, %s2265_s16, %s2265_s16, %s2266_s8  }
  0xb6   : > { %s2083_s22 = scalar_lea.hbm %s2540_s6, 1024  ;;  %p2961_p13 = scmp.ne.s32.totalorder %s2954_s26, 0 }
  0xb7   : > { %p2084_p9 = scmp.ne.s32.totalorder %s2540_s6, %s2083_s22  ;;  %s2088_s27 = scalar_lea.hbm %s2880_s7, 2048 }
  0xb8   : > { %p2962_p7 = pneg %p2961_p13  ;;  %p2089_p6 = scmp.lt.u32.totalorder %s2540_s6, %s2880_s7 }
  0xb9   : > { %p2090_p5 = scmp.lt.u32.totalorder %s2088_s27, %s2083_s22  ;;  %p2092_p4 = scmp.lt.u32.totalorder %s2083_s22, %s2540_s6 }
  0xba   : > { %p2086_p12 = pnand %p2084_p9, %p2962_p7 }
  0xbb   : > { %p2091_p10 = por %p2090_p5, %p2089_p6 }
  0xbc   : > { %p2087_p1 = pneg %p2086_p12 }
  0xbd   : > { %p2093_p2 = por %p2092_p4, %p2091_p10 }
  0xbf   : > { %p2094_p0 = pnand %p2093_p2, %p2087_p1 }
  0xc1   : > { %2097 = shalt.err (!%p2094_p0)
}
  0xc2   : > { %s2098_s10 = scalar_lea.vmem %s2576_s13, 1024  ;;  %p2963_p11 = pmov %p2962_p7 }
  0xc3   : > { %p2099_p3 = scmp.ne.s32.totalorder %s2576_s13, %s2098_s10  ;;  %s2267_s30 = smov [#allocation13]  }
  0xc4   : > { %s2103_s14 = sshll.u32 %s2267_s30, 4  ;;  %s2104_s14 = int_to_ptr.vmem [resolvable:$false] %s2103_s14 }
  0xc5   : > { %p2101_p8 = pnand %p2099_p3, %p2963_p11  ;;  %s2105_s25 = scalar_lea.vmem %s2104_s14, 2048 }
  0xc6   : > { %p2106_p7 = scmp.lt.s32.totalorder %s2576_s13, %s2104_s14  ;;  %p2107_p12 = scmp.lt.s32.totalorder %s2105_s25, %s2098_s10 }
  0xc7   : > { %p2102_p9 = pneg %p2101_p8 }
  0xc8   : > { %p2108_p6 = por %p2107_p12, %p2106_p7 }
  0xca   : > { %p2109_p5 = pnand %p2108_p6, %p2102_p9 }
  0xcc   : > { %2112 = shalt.err (!%p2109_p5)
}
  0xcd   : > { %1815 = dma.hbm_to_vmem [thread:$0]  (!%p2961_p13), %s2540_s6, 1024, %s2576_s13, %s2544_s19, %s2957_s9, %s2957_s9, %s2956_s17  }
  0xce   : > { %p2964_p1 = scmp.ne.s32.totalorder %s2937_s29, 0 }
  0xcf   : > { %s602_s1 = sand.u32 (!%p2964_p1), 1, %s2241_s21   ;;  %p2965_p10 = scmp.ne.s32.totalorder (!%p2964_p1), %s2939_s11, 0 }
  0xd0   : > { %600 = sbr.rel (%p2964_p1) target bundleno = 1303 (0x517), region = 60  ;;  %s1610_s28 = sshll.u32 (!%p2964_p1), %s602_s1, 2 }
  0xd1   : > { %s603_s2 = scalar_lea.sflag (!%p2964_p1), [#allocation6], %s602_s1  ;;  %s2672_s20 = scalar_lea.vmem (!%p2964_p1), [#allocation5], %s1610_s28 }
  0xd7   : > { %2204 = dma.done.wait (%p2965_p10), %s603_s2, 64  }
  0xd8   : > { %2206 = vsyncadd (%p2965_p10), %s603_s2, 4294967232  ;;  %s611_s26 = sand.u32 1, %s2457_s15   ;;  %s1611_s24 = sshll.u32 %s602_s1, 6 }
  0xd9   : > { %s612_s19 = scalar_lea.sflag [#allocation9], %s611_s26  ;;  %s2679_s6 = scalar_lea.vmem [#allocation8], %s1611_s24 }
  0xda   : > { %2208 = dma.done.wait (%p2965_p10), %s612_s19, 3072  }
  0xdb   : > { %2210 = vsyncadd (%p2965_p10), %s612_s19, 4294964224  ;;  %s2966_s29 = sld [smem:[#allocation31_spill]]  ;;  %s1612_s17 = sshll.u32 %s602_s1, 7 }
  0xdc   : > { %s2686_s9 = sand.u32 1, %s2229_s18   ;;  %s2689_s16 = scalar_lea.vmem [#allocation10], %s1612_s17 }
  0xdd   : > { %s1613_s13 = sshll.u32 %s2686_s9, 6  ;;  %s630_s8 = scalar_lea.sflag [#allocation12], %s611_s26 }
  0xde   : > { %s2691_s22 = scalar_lea.vmem [#allocation11], %s1613_s13 }
  0xe1   : > { %p2967_p13 = scmp.ne.s32.totalorder %s2966_s29, 0 }
  0xe3   : > { %2212 = dma.done.wait (%p2967_p13), %s630_s8, 2048  }
  0xe4   : > { %2214 = vsyncadd (%p2967_p13), %s630_s8, 4294965248  ;;  %s2968_s11 = sld [smem:[#allocation25_spill]]  ;;  %s1615_s23 = sshll.u32 %s2686_s9, 3 }
  0xe5   : > { %s2969_s10 = sld [smem:[#allocation36_spill]]  ;;  %s2970_s28 = sld [smem:[#allocation38_spill]] }
  0xe6   : > { %s2971_s29 = sld [smem:[#allocation40_spill]]  ;;  %s2972_s3 = sld [smem:[#allocation41_spill]] }
  0xe7   : > { %s2726_s4 = scalar_lea.vmem [#allocation13], %s1613_s13 }
  0xea   : > { %p732_p4 = scmp.lt.s32.totalorder %s2968_s11, 1  ;;  %s1623_s5 = sadd.s32 4294967294, %s2968_s11 }
  0xeb   : > { %p753_p2 = scmp.gt.s32.totalorder %s1623_s5, 0  ;;  %p1624_p0 = scmp.lt.s32.totalorder %s1623_s5, 1 }
  0xec   : > { %s733_s27 = scalar_select %p732_p4, %s2968_s11, 1 }
  0xed   : > { %s3014_s5 = smov (!%p753_p2, %s1623_s5), 0  ;;  %p1635_p3 = scmp.ne.s32.totalorder %s2968_s11, 0 }
  0xee   : > { %s3012_s27 = smov (!%p732_p4, %s733_s27), 1  ;;  %v2268_v0 = vmov (!%p1635_p3), 0.0  }
  0xef   : > { %s736_s30 = scalar_lea.vmem %s2969_s10, %s3012_s27  ;;  %s1622_s14 = sshll.u32 %s3012_s27, 1  ;;  %785 = vst [vmem:[#allocation2] sm:$0xff] (!%p1635_p3), %v2268_v0  ;;  %786 = vst [vmem:[#allocation3] sm:$0xff] (!%p1635_p3), %v2268_v0 }
  0xf0   : > { %s2713_s2 = scalar_lea.vmem %s2970_s28, %s1622_s14  ;;  %s2728_s10 = scalar_lea.vmem [#allocation14], %s1615_s23 }
  0xf1   : > { %s2716_s26 = scalar_select %p1624_p0, %s3014_s5, 1 }
  0xf2   : > { %784 = sbr.rel (%p1635_p3) target bundleno = 249 (0xf9), region = 84 }
  0xf3   : > { %s757_s17 = scalar_lea.vmem %s2971_s29, %s2716_s26  ;;  %s769_s12 = scalar_lea.vmem %s2972_s3, %s2716_s26 }
  0xf9 PF: > { %s2973_s14 = sld [smem:[#allocation25_spill]] }
  0xff   : > { %p1636_p11 = scmp.ge.s32.totalorder %s2973_s14, 2 }
 0x100   : > { %v1907_v1 = vld [vmem:[%s2679_s6] sm:$0xff] (!%p1636_p11)   ;;  %v2269_v2 = vmov (!%p1636_p11), 0.0   ;;  %v1908_v3 = vld [vmem:[%s2679_s6 + $0x8] sm:$0xff] (!%p1636_p11)   ;;  %vm2270_vm0 = vmmov (!%p1636_p11), 0   ;;  %v1909_v4 = vld [vmem:[%s2679_s6 + $0x10] sm:$0xff] (!%p1636_p11)   ;;  %v2271_v27 = vmov (!%p1636_p11), 0   ;;  %v923_v36 = vlaneseq (!%p1636_p11) }
 0x101   : > { %790 = sbr.rel (%p1636_p11) target bundleno = 742 (0x2e6), region = 88  ;;  %1724 = vmatprep.subr.bf16.mxu0 (!%p1636_p11), %v2269_v2  ;;  %1740 = vmatprep.mubr.msk.bf16.mxu0 (!%p1636_p11), %vm2270_vm0, %v2269_v2  ;;  %v1915_v5 = vld [vmem:[%s2689_s16 + $0x4] ss:$8 sps:$4 sm:$0xff] (!%p1636_p11)   ;;  %v1917_v6 = vld [vmem:[%s2689_s16] ss:$8 sps:$4 sm:$0xff] (!%p1636_p11)   ;;  %v1910_v7 = vld [vmem:[%s2679_s6 + $0x18] sm:$0xff] (!%p1636_p11)  }
 0x102   : > { %1725 = vmatpush3.bf16.msra.mxu0 (!%p1636_p11), %v1907_v1  ;;  %v1918_v8 = vld [vmem:[%s2689_s16 + $0x14] ss:$8 sps:$4 sm:$0xff] (!%p1636_p11)   ;;  %1013 = vmatprep.subr.bf16.mxu1 (!%p1636_p11), %v1915_v5  ;;  %v1920_v9 = vld [vmem:[%s2689_s16 + $0x10] ss:$8 sps:$4 sm:$0xff] (!%p1636_p11)   ;;  %v1921_v10 = vld [vmem:[%s2689_s16 + $0x24] ss:$8 sps:$4 sm:$0xff] (!%p1636_p11)  }
 0x103   : > { %1726 = vmatprep.subr.bf16.mxu0 (!%p1636_p11), %v2269_v2  ;;  %1014 = vmatpush1.bf16.msra.mxu1 (!%p1636_p11), %v1917_v6  ;;  %v1911_v11 = vld [vmem:[%s2679_s6 + $0x20] sm:$0xff] (!%p1636_p11)   ;;  %v1924_v13 = vld [vmem:[%s2689_s16 + $0x34] ss:$8 sps:$4 sm:$0xff] (!%p1636_p11)   ;;  %v1912_v14 = vld [vmem:[%s2679_s6 + $0x28] sm:$0xff] (!%p1636_p11)   ;;  %v924_v37 = vshrl.u32 (!%p1636_p11), %v923_v36, 7 }
 0x104   : > { %1015 = vmatprep.subr.bf16.mxu1 (!%p1636_p11), %v1918_v8  ;;  %v1923_v12 = vld [vmem:[%s2689_s16 + $0x20] ss:$8 sps:$4 sm:$0xff] (!%p1636_p11)   ;;  %v1926_v15 = vld [vmem:[%s2689_s16 + $0x30] ss:$8 sps:$4 sm:$0xff] (!%p1636_p11)   ;;  %v1927_v16 = vld [vmem:[%s2689_s16 + $0x44] ss:$8 sps:$4 sm:$0xff] (!%p1636_p11)   ;;  %1045 = vmatprep.mubr.bf16.mxu1 (!%p1636_p11), %v2271_v27 }
 0x105   : > { %v1913_v17 = vld [vmem:[%s2679_s6 + $0x30] sm:$0xff] (!%p1636_p11)   ;;  %v1929_v18 = vld [vmem:[%s2689_s16 + $0x40] ss:$8 sps:$4 sm:$0xff] (!%p1636_p11)   ;;  %v1914_v20 = vld [vmem:[%s2679_s6 + $0x38] sm:$0xff] (!%p1636_p11)   ;;  %v929_v38 = vsub.s32 (!%p1636_p11), 1, %v924_v37  ;;  %v925_v48 = vsub.s32 (!%p1636_p11), 0, %v924_v37 }
 0x106   : > { %1727 = vmatpush3.bf16.msra.mxu0 (!%p1636_p11), %v1908_v3  ;;  %v1930_v19 = vld [vmem:[%s2689_s16 + $0x54] ss:$8 sps:$4 sm:$0xff] (!%p1636_p11)   ;;  %v1932_v21 = vld [vmem:[%s2689_s16 + $0x50] ss:$8 sps:$4 sm:$0xff] (!%p1636_p11)   ;;  %v1933_v22 = vld [vmem:[%s2689_s16 + $0x64] ss:$8 sps:$4 sm:$0xff] (!%p1636_p11)  }
 0x107   : > { %1728 = vmatprep.subr.bf16.mxu0 (!%p1636_p11), %v2269_v2  ;;  %1016 = vmatpush1.bf16.msra.mxu1 (!%p1636_p11), %v1920_v9  ;;  %v791_v23 = vld [vmem:[%s2672_s20] sm:$0xf] (!%p1636_p11)  ;;  %v1935_v24 = vld [vmem:[%s2689_s16 + $0x60] ss:$8 sps:$4 sm:$0xff] (!%p1636_p11)  }
 0x108   : > { %1017 = vmatprep.subr.bf16.mxu1 %v1921_v10  ;;  %v1936_v25 = vld [vmem:[%s2689_s16 + $0x74] ss:$8 sps:$4 sm:$0xff]   ;;  %v1938_v26 = vld [vmem:[%s2689_s16 + $0x70] ss:$8 sps:$4 sm:$0xff]   ;;  %v1637_v28 = vld [vmem:[%s736_s30] ss:$0 sm:$0xff] }
 0x109   : > { %v921_v39 = vld [vmem:[%s2713_s2] sm:$0x3]  ;;  %v1060_v53 = vld [vmem:[#allocation3] sm:$0xff] }
 0x10a   : > { %1729 = vmatpush3.bf16.msra.mxu0 %v1909_v4  ;;  %v930_v40 = vrot.slane %v921_v39, %v929_v38  ;;  %v926_v49 = vrot.slane %v921_v39, %v925_v48  ;;  %v1057_v50 = vld [vmem:[#allocation2] sm:$0xff] }
 0x10b   : > { %1730 = vmatprep.subr.bf16.mxu0 %v2269_v2  ;;  %1018 = vmatpush1.bf16.msra.mxu1 %v1923_v12 }
 0x10c   : > { %1019 = vmatprep.subr.bf16.mxu1 %v1924_v13 }
 0x10e   : > { %1731 = vmatpush3.bf16.msra.mxu0 %v1910_v7 }
 0x10f   : > { %1732 = vmatprep.subr.bf16.mxu0 %v2269_v2  ;;  %1020 = vmatpush1.bf16.msra.mxu1 %v1926_v15 }
 0x110   : > { %1021 = vmatprep.subr.bf16.mxu1 %v1927_v16 }
 0x112   : > { %1733 = vmatpush3.bf16.msra.mxu0 %v1911_v11 }
 0x113   : > { %1734 = vmatprep.subr.bf16.mxu0 %v2269_v2  ;;  %1022 = vmatpush1.bf16.msra.mxu1 %v1929_v18 }
 0x114   : > { %1023 = vmatprep.subr.bf16.mxu1 %v1930_v19 }
 0x116   : > { %1735 = vmatpush3.bf16.msra.mxu0 %v1912_v14 }
 0x117   : > { %1736 = vmatprep.subr.bf16.mxu0 %v2269_v2  ;;  %1024 = vmatpush1.bf16.msra.mxu1 %v1932_v21 }
 0x118   : > { %1025 = vmatprep.subr.bf16.mxu1 %v1933_v22 }
 0x11a   : > { %1737 = vmatpush3.bf16.msra.mxu0 %v1913_v17 }
 0x11b   : > { %1738 = vmatprep.subr.bf16.mxu0 %v2269_v2  ;;  %1026 = vmatpush1.bf16.msra.mxu1 %v1935_v24 }
 0x11c   : > { %1027 = vmatprep.subr.bf16.mxu1 %v1936_v25 }
 0x11e   : > { %1739 = vmatpush3.bf16.msra.mxu0 %v1914_v20 }
 0x11f   : > { %1028 = vmatpush1.bf16.msra.mxu1 %v1938_v26 }
 0x121   : > { %1741 = vmatmul.mubr.bf16.vlgmr.msra.gmra.mrb[0].mxu0 %v791_v23 }
 0x1f4   : > { %v897_v29 = vpop.f32.mrb[0].mxu0 }
 0x1f5   : > { %v898_v30 = vadd.f32 %v1637_v28, %v897_v29  ;;  %v1742_v31 = vpop.f32.mrb[1].mxu0 }
 0x1f6   : > { %v900_v32 = vpop.f32.mrb[2].mxu0 }
 0x1f7   : > { %v903_v33 = vmax.f32 %v898_v30, 0.0  ;;  %v1743_v34 = vpop.f32.mrb[3].mxu0 }
 0x1f9   : > { %v904_v35 = vpack.c.bf16 %v903_v33, %v903_v33 }
 0x1fb   : > { %1046 = vmatmul.mubr.bf16.vlgmr.msra.gmra.mrb[0].mxu1 %v904_v35 }
 0x2ce   : > { %v1047_v41 = vpop.f32.mrb[0].mxu1 }
 0x2cf   : > { %v1049_v42 = vpop.f32.mrb[1].mxu1  ;;  %v1048_v51 = vadd.f32 %v1047_v41, %v926_v49 }
 0x2d0   : > { %v1050_v43 = vadd.f32 %v1049_v42, %v930_v40  ;;  %v1051_v44 = vpop.f32.mrb[2].mxu1 }
 0x2d1   : > { %v1052_v45 = vpop.f32.mrb[3].mxu1 }
 0x2d2   : > { %v1054_v46 = vsub.f32 0.0, %v1050_v43 }
 0x2d4   : > { %v1055_v47 = vmul.f32 1.442695, %v1054_v46 }
 0x2d6   : > { %1939 = vpow2.f32 %v1055_v47 }
 0x2e0   : > { %v1940_v52 = vpop.eup %1939 }
 0x2e1   : > { %v1058_v54 = vadd.f32 %v1940_v52, %v1057_v50  ;;  %v1061_v55 = vmul.f32 %v1940_v52, %v1048_v51 }
 0x2e3   : > { %1059 = vst [vmem:[#allocation2] sm:$0xff] %v1058_v54  ;;  %v1062_v56 = vadd.f32 %v1061_v55, %v1060_v53 }
 0x2e5   : > { %1063 = vst [vmem:[#allocation3] sm:$0xff] %v1062_v56 }
 0x2e6 PF: > { %s2975_s20 = sld [smem:[#allocation25_spill]] }
 0x2ec   : > { %p1662_p8 = scmp.ne.s32.totalorder %s2975_s20, 1 }
 0x2ed   : > { %v1068_v57 = vld [vmem:[#allocation2] sm:$0xff] (!%p1662_p8)  ;;  %v1070_v58 = vld [vmem:[#allocation3] sm:$0xff] (!%p1662_p8)  ;;  %s2976_s11 = sld [smem:[#allocation42_spill]] (!%p1662_p8) }
 0x2ee   : > { %1067 = sbr.rel (%p1662_p8) target bundleno = 768 (0x300), region = 92  ;;  %1941 = vrcp.f32 (!%p1662_p8), %v1068_v57 }
 0x2ef   : > { %1943 = vrsqrt.f32 (!%p1662_p8), %v1068_v57 }
 0x2f0   : > { %1945 = vlog2.f32 (!%p1662_p8), %v1068_v57 }
 0x2f3   : > { %v1076_v59 = vld [vmem:[%s2976_s11] sm:$0xff] (!%p1662_p8) }
 0x2f8   : > { %v1942_v60 = vpop.eup %1941 }
 0x2f9   : > { %v1944_v61 = vpop.eup %1943  ;;  %v1071_v62 = vmul.f32 %v1942_v60, %v1070_v58 }
 0x2fa   : > { %v1946_v63 = vpop.eup %1945  ;;  %v1077_v0 = vmul.f32 %v1944_v61, %v1076_v59 }
 0x2fb   : > { %1080 = vst [vmem:[#allocation15] sm:$0xff] %v1071_v62  ;;  %v1073_v1 = vmul.f32 0.6931472, %v1946_v63 }
 0x2fc   : > { %v1078_v2 = vadd.f32 %v1077_v0, %v1071_v62 }
 0x2fd   : > { %v1074_v3 = vsub.f32 0.0, %v1073_v1 }
 0x2fe   : > { %1079 = vst [vmem:[#allocation4] sm:$0xff] %v1078_v2 }
 0x2ff   : > { %1081 = vst [vmem:[#allocation15 + $0x8] sm:$0xff] %v1074_v3 }
 0x300 PF: > { %s2977_s23 = sld [smem:[#allocation25_spill]] }
 0x306   : > { %p1663_p9 = scmp.lt.s32.totalorder %s2977_s23, 2 }
 0x307   : > { %v1947_v4 = vld [vmem:[%s2691_s22] sm:$0xff] (!%p1663_p9)   ;;  %v2272_v5 = vmov (!%p1663_p9), 0.0   ;;  %v1948_v6 = vld [vmem:[%s2691_s22 + $0x8] sm:$0xff] (!%p1663_p9)   ;;  %vm2273_vm1 = vmmov (!%p1663_p9), 0   ;;  %v1949_v7 = vld [vmem:[%s2691_s22 + $0x10] sm:$0xff] (!%p1663_p9)  }
 0x308   : > { %1085 = sbr.rel (%p1663_p9) target bundleno = 1241 (0x4d9), region = 96  ;;  %1744 = vmatprep.subr.bf16.mxu0 (!%p1663_p9), %v2272_v5  ;;  %1764 = vmatprep.subr.bf16.mxu1 (!%p1663_p9), %v2272_v5  ;;  %v1955_v8 = vld [vmem:[%s2726_s4] sm:$0xff] (!%p1663_p9)   ;;  %v1950_v9 = vld [vmem:[%s2691_s22 + $0x18] sm:$0xff] (!%p1663_p9)   ;;  %v1956_v10 = vld [vmem:[%s2726_s4 + $0x8] sm:$0xff] (!%p1663_p9)  }
 0x309   : > { %1745 = vmatpush3.bf16.msra.mxu0 (!%p1663_p9), %v1947_v4  ;;  %1760 = vmatprep.mubr.msk.bf16.mxu0 (!%p1663_p9), %vm2273_vm1, %v2272_v5  ;;  %v1951_v11 = vld [vmem:[%s2691_s22 + $0x20] sm:$0xff] (!%p1663_p9)   ;;  %v1957_v12 = vld [vmem:[%s2726_s4 + $0x10] sm:$0xff] (!%p1663_p9)   ;;  %v1952_v13 = vld [vmem:[%s2691_s22 + $0x28] sm:$0xff] (!%p1663_p9)  }
 0x30a   : > { %1746 = vmatprep.subr.bf16.mxu0 (!%p1663_p9), %v2272_v5  ;;  %1780 = vmatprep.mubr.msk.bf16.mxu1 (!%p1663_p9), %vm2273_vm1, %v2272_v5  ;;  %v1958_v14 = vld [vmem:[%s2726_s4 + $0x18] sm:$0xff] (!%p1663_p9)   ;;  %v1953_v15 = vld [vmem:[%s2691_s22 + $0x30] sm:$0xff] (!%p1663_p9)   ;;  %v1959_v16 = vld [vmem:[%s2726_s4 + $0x20] sm:$0xff] (!%p1663_p9)  }
 0x30b   : > { %1765 = vmatpush3.bf16.msra.mxu1 (!%p1663_p9), %v1955_v8  ;;  %v1954_v17 = vld [vmem:[%s2691_s22 + $0x38] sm:$0xff] (!%p1663_p9)   ;;  %v1086_v18 = vld [vmem:[#allocation4] sm:$0xff] (!%p1663_p9)  ;;  %v1960_v19 = vld [vmem:[%s2726_s4 + $0x28] sm:$0xff] (!%p1663_p9)  }
 0x30c   : > { %1766 = vmatprep.subr.bf16.mxu1 (!%p1663_p9), %v2272_v5  ;;  %v1087_v20 = vpack.c.bf16 (!%p1663_p9), %v1086_v18, %v1086_v18  ;;  %v1961_v21 = vld [vmem:[%s2726_s4 + $0x30] sm:$0xff] (!%p1663_p9)   ;;  %v1962_v22 = vld [vmem:[%s2726_s4 + $0x38] sm:$0xff] (!%p1663_p9)   ;;  %v1664_v23 = vld [vmem:[%s757_s17] ss:$0 sm:$0xff] (!%p1663_p9) }
 0x30d   : > { %1747 = vmatpush3.bf16.msra.mxu0 (!%p1663_p9), %v1948_v6  ;;  %v1673_v31 = vld [vmem:[%s769_s12] ss:$0 sm:$0xff] (!%p1663_p9) }
 0x30e   : > { %1748 = vmatprep.subr.bf16.mxu0 (!%p1663_p9), %v2272_v5 }
 0x30f   : > { %1767 = vmatpush3.bf16.msra.mxu1 %v1956_v10 }
 0x310   : > { %1768 = vmatprep.subr.bf16.mxu1 %v2272_v5 }
 0x311   : > { %1749 = vmatpush3.bf16.msra.mxu0 %v1949_v7 }
 0x312   : > { %1750 = vmatprep.subr.bf16.mxu0 %v2272_v5 }
 0x313   : > { %1769 = vmatpush3.bf16.msra.mxu1 %v1957_v12 }
 0x314   : > { %1770 = vmatprep.subr.bf16.mxu1 %v2272_v5 }
 0x315   : > { %1751 = vmatpush3.bf16.msra.mxu0 %v1950_v9 }
 0x316   : > { %1752 = vmatprep.subr.bf16.mxu0 %v2272_v5 }
 0x317   : > { %1771 = vmatpush3.bf16.msra.mxu1 %v1958_v14 }
 0x318   : > { %1772 = vmatprep.subr.bf16.mxu1 %v2272_v5 }
 0x319   : > { %1753 = vmatpush3.bf16.msra.mxu0 %v1951_v11 }
 0x31a   : > { %1754 = vmatprep.subr.bf16.mxu0 %v2272_v5 }
 0x31b   : > { %1773 = vmatpush3.bf16.msra.mxu1 %v1959_v16 }
 0x31c   : > { %1774 = vmatprep.subr.bf16.mxu1 %v2272_v5 }
 0x31d   : > { %1755 = vmatpush3.bf16.msra.mxu0 %v1952_v13 }
 0x31e   : > { %1756 = vmatprep.subr.bf16.mxu0 %v2272_v5 }
 0x31f   : > { %1775 = vmatpush3.bf16.msra.mxu1 %v1960_v19 }
 0x320   : > { %1776 = vmatprep.subr.bf16.mxu1 %v2272_v5 }
 0x321   : > { %1757 = vmatpush3.bf16.msra.mxu0 %v1953_v15 }
 0x322   : > { %1758 = vmatprep.subr.bf16.mxu0 %v2272_v5 }
 0x323   : > { %1777 = vmatpush3.bf16.msra.mxu1 %v1961_v21 }
 0x324   : > { %1778 = vmatprep.subr.bf16.mxu1 %v2272_v5 }
 0x325   : > { %1759 = vmatpush3.bf16.msra.mxu0 %v1954_v17 }
 0x327   : > { %1779 = vmatpush3.bf16.msra.mxu1 %v1962_v22 }
 0x328   : > { %1761 = vmatmul.mubr.bf16.vlgmr.msra.gmra.mrb[0].mxu0 %v1087_v20 }
 0x3fb   : > { %v1193_v24 = vpop.f32.mrb[0].mxu0 }
 0x3fc   : > { %v1194_v25 = vadd.f32 %v1664_v23, %v1193_v24  ;;  %v1762_v26 = vpop.f32.mrb[1].mxu0 }
 0x3fd   : > { %v1196_v27 = vpop.f32.mrb[2].mxu0 }
 0x3fe   : > { %v1199_v28 = vmax.f32 %v1194_v25, 0.0  ;;  %v1763_v29 = vpop.f32.mrb[3].mxu0 }
 0x400   : > { %v1200_v30 = vpack.c.bf16 %v1199_v28, %v1199_v28 }
 0x402   : > { %1781 = vmatmul.mubr.bf16.vlgmr.msra.gmra.mrb[0].mxu1 %v1200_v30 }
 0x4d5   : > { %v1306_v32 = vpop.f32.mrb[0].mxu1 }
 0x4d6   : > { %v1307_v33 = vadd.f32 %v1673_v31, %v1306_v32  ;;  %v1782_v34 = vpop.f32.mrb[1].mxu1 }
 0x4d7   : > { %v1309_v35 = vpop.f32.mrb[2].mxu1 }
 0x4d8   : > { %1312 = vst [vmem:[%s2728_s10] sm:$0xff] %v1307_v33  ;;  %v1783_v36 = vpop.f32.mrb[3].mxu1 }
 0x4d9 PF: > { %s2980_s2 = sld [smem:[#allocation32_spill]]  ;;  %s1684_s24 = sshll.u32 %s3014_s5, 7 }
 0x4da   : > { %s2981_s17 = sld [smem:[#allocation43_spill]]  ;;  %s1331_s14 = sshll.u32 %s2728_s10, 4  ;;  %s1332_s14 = int_to_ptr.vmem [resolvable:$true] %s1331_s14 }
 0x4db   : > { %s1314_s26 = scalar_lea.sflag [#allocation7], %s2686_s9  ;;  %s2113_s12 = scalar_lea.vmem %s1332_s14, 128 }
 0x4dc   : > { %p2114_p7 = scmp.ne.s32.totalorder %s1332_s14, %s2113_s12  ;;  %s2274_s0 = smov [#allocation14]  }
 0x4dd   : > { %s2117_s3 = sshll.u32 %s2274_s0, 4  ;;  %s2118_s3 = int_to_ptr.vmem [resolvable:$false] %s2117_s3 }
 0x4de   : > { %s2119_s6 = scalar_lea.vmem %s2118_s3, 256  ;;  %p2120_p1 = scmp.lt.s32.totalorder %s1332_s14, %s2118_s3 }
 0x4df   : > { %p2983_p12 = scmp.ne.s32.totalorder %s2980_s2, 0  ;;  %p2121_p10 = scmp.lt.s32.totalorder %s2119_s6, %s2113_s12 }
 0x4e0   : > { %s2982_s8 = smov %s2981_s17  ;;  %s2799_s4 = scalar_lea.hbm %s2981_s17, %s1684_s24 }
 0x4e1   : > { %p2115_p6 = pnand %p2114_p7, %p2983_p12  ;;  %p2122_p13 = por %p2121_p10, %p2120_p1 }
 0x4e3   : > { %p2116_p5 = pneg %p2115_p6 }
 0x4e5   : > { %p2123_p4 = pnand %p2122_p13, %p2116_p5 }
 0x4e7   : > { %2126 = shalt.err (!%p2123_p4)
}
 0x4e8   : > { %s2127_s9 = scalar_lea.hbm %s2799_s4, 128  ;;  %s2131_s20 = scalar_lea.hbm %s2982_s8, 256 }
 0x4e9   : > { %p2128_p2 = scmp.ne.s32.totalorder %s2799_s4, %s2127_s9  ;;  %p2132_p11 = scmp.lt.u32.totalorder %s2799_s4, %s2982_s8 }
 0x4ea   : > { %p2133_p8 = scmp.lt.u32.totalorder %s2131_s20, %s2127_s9  ;;  %p2135_p7 = scmp.lt.u32.totalorder %s2127_s9, %s2799_s4 }
 0x4eb   : > { %p2129_p0 = pnand %p2128_p2, %p2983_p12 }
 0x4ec   : > { %p2134_p9 = por %p2133_p8, %p2132_p11 }
 0x4ed   : > { %p2130_p3 = pneg %p2129_p0 }
 0x4ee   : > { %p2136_p6 = por %p2135_p7, %p2134_p9 }
 0x4f0   : > { %p2137_p5 = pnand %p2136_p6, %p2130_p3 }
 0x4f2   : > { %2140 = shalt.err (!%p2137_p5)
}
 0x4f3   : > { %1794 = dma.vmem_to_hbm [thread:$0]  (%p2983_p12), %s1332_s14, 128, %s2799_s4, %s1314_s26  }
 0x4f4   : > { %s2275_s11 = smov [#allocation15]   ;;  %p2984_p10 = scmp.eq.s32.totalorder %s2457_s15, 3 }
 0x4f5   : > { %s1345_s23 = sshll.u32 %s2275_s11, 4  ;;  %s1346_s23 = int_to_ptr.vmem [resolvable:$true] %s1345_s23 }
 0x4f6   : > { %s2141_s27 = scalar_lea.vmem %s1346_s23, 256  ;;  %p2148_p2 = scmp.lt.s32.totalorder %s1346_s23, %s1346_s23 }
 0x4f7   : > { %p2142_p1 = scmp.ne.s32.totalorder %s1346_s23, %s2141_s27  ;;  %p2149_p0 = scmp.lt.s32.totalorder %s2141_s27, %s2141_s27 }
 0x4f9   : > { %p2143_p13 = pnand %p2142_p1, %p2984_p10  ;;  %p2150_p11 = por %p2149_p0, %p2148_p2 }
 0x4fb   : > { %p2144_p4 = pneg %p2143_p13 }
 0x4fd   : > { %p2151_p8 = pnand %p2150_p11, %p2144_p4 }
 0x4ff   : > { %2154 = shalt.err (!%p2151_p8)
}
 0x500   : > { %s2985_s25 = sld [smem:[#allocation44_spill]]  ;;  %p2987_p3 = pmov %p2984_p10 }
 0x506   : > { %s2986_s1 = smov %s2985_s25  ;;  %s2155_s28 = scalar_lea.hbm %s2985_s25, 256 }
 0x507   : > { %p2156_p12 = scmp.ne.s32.totalorder %s2986_s1, %s2155_s28  ;;  %p2161_p6 = scmp.lt.u32.totalorder %s2155_s28, %s2986_s1 }
 0x509   : > { %p2157_p9 = pnand %p2156_p12, %p2987_p3 }
 0x50b   : > { %p2158_p7 = pneg %p2157_p9 }
 0x50d   : > { %p2163_p5 = pnand %p2161_p6, %p2158_p7 }
 0x50f   : > { %2166 = shalt.err (!%p2163_p5)
}
 0x510   : > { %p2988_p1 = pmov %p2987_p3 }
 0x512   : > { %1796 = dma.vmem_to_hbm [thread:$0]  (%p2988_p1), %s1346_s23, 256, %s2986_s1, [#allocation16]  }
 0x513   : > { %p2989_p10 = pmov %p2988_p1 }
 0x514   : > { %p2990_p13 = pmov %p2988_p1 }
 0x515   : > { %2216 = dma.done.wait (%p2989_p10), [#allocation16], 256  }
 0x516   : > { %2218 = vsyncadd (%p2990_p13), [#allocation16], 4294967040 }
 0x517 PF: > { %s2991_s14 = sld [smem:[#allocation27_spill]]  ;;  %s2992_s26 = sld [smem:[#allocation22_spill]] }
 0x518   : > { %s2993_s12 = sld [smem:[#allocation33_spill]] }
 0x51d   : > { %p1823_p4 = scmp.ge.s32.totalorder %s2991_s14, 2  ;;  %s1361_s0 = sand.u32 1, %s2992_s26  }
 0x51e   : > { %p2994_p2 = scmp.ne.s32.totalorder %s2993_s12, 0  ;;  %s1362_s3 = scalar_lea.sflag [#allocation7], %s1361_s0 }
 0x520   : > { %p1817_p0 = pnand %p1823_p4, %p2994_p2 }
 0x522   : > { %2220 = dma.done.wait (!%p1817_p0), %s1362_s3, 128  }
 0x523   : > { %2222 = vsyncadd (!%p1817_p0), %s1362_s3, 4294967168  ;;  %s35_s25 = sadd.s32 1, %s2991_s14   ;;  %s2995_s6 = sld [smem:[#allocation23_spill]] }
 0x524   : > { %p32_p11 = scmp.ge.s32.totalorder %s35_s25, 6   ;;  %s2996_s19 = sld [smem:[#allocation30_spill]] }
 0x525   : > { %s2997_s15 = sld [smem:[#allocation24_spill]]  ;;  %s2998_s22 = sld [smem:[#allocation29_spill]] }
 0x526   : > { %s2999_s23 = sld [smem:[#allocation26_spill]]  ;;  %s3000_s24 = sld [smem:[#allocation28_spill]] }
 0x527   : > { %s3001_s17 = smov %s2229_s18  ;;  %s3003_s20 = smov %s2241_s21 }
 0x528   :  { %34 = sbr.rel (!%p32_p11) target bundleno = 25 (0x19), region = 193 }
 0x529   : > { %s3002_s18 = smov %s2995_s6 }
 0x52b   : > { %s3004_s21 = smov %s2997_s15 }
 0x52f   :  { %1367 = vsyncpa [#allocation6], 1 }
 0x530   :  { %1369 = vsyncpa [#allocation6 + $0x1], 1 }
 0x531   :  { %1370 = vsyncpa [#allocation9], 1 }
 0x532   :  { %1372 = vsyncpa [#allocation9 + $0x1], 1 }
 0x533   :  { %1373 = vsyncpa [#allocation12], 1 }
 0x534   :  { %1375 = vsyncpa [#allocation12 + $0x1], 1 }
 0x535   :  { %1376 = vsyncpa [#allocation7], 1 }
 0x536   :  { %1378 = vsyncpa [#allocation7 + $0x1], 1 }
 0x537   :  { %1379 = vsyncpa [#allocation16], 1 }

</bundles_post_ra>
